<compile_context>
chip_gen: v6e
topology: v6e:2x2x1
jax: 0.10.0
libtpu: 0.0.40
codegen_flags: <defaults>
</compile_context>

<pallas_src>
import functools
import math

import jax
import jax.numpy as jnp
from jax.experimental import pallas as pl
from jax.experimental.pallas import tpu as pltpu

LN_EPS = 1e-5


def _layernorm(x, g, b):
    mu = jnp.mean(x, axis=-1, keepdims=True)
    var = jnp.mean((x - mu) ** 2, axis=-1, keepdims=True)
    return (x - mu) * jax.lax.rsqrt(var + LN_EPS) * g + b


# ----------------------------------------------------------------------------
# Fused kernel: all encoder layers + final LN + attention pooling.
# Grid = (num_layers,), "arbitrary".  Residual stream (B*S, D) stays resident
# in VMEM scratch across layers; each layer's weights are fetched exactly once.
# ----------------------------------------------------------------------------
def fused_encoder_kernel(num_heads, batch, seq,
                         x_ref, mask_ref,
                         wqkv_ref, wo_ref, w1_ref, w2_ref,
                         lvec_ref, hvec_ref,
                         pooled_ref,
                         act_ref):
    layer = pl.program_id(0)
    n_layers = pl.num_programs(0)
    B, S, H = batch, seq, num_heads
    N, D = act_ref.shape                      # N = B*S
    hd = D // H
    F = w1_ref.shape[-1]

    @pl.when(layer == 0)
    def _():
        act_ref[...] = x_ref[...]

    x = act_ref[...]                           # (N, D) f32 residual stream

    # packed per-layer vectors: [bqkv, bo, ln1g, ln1b, b1, b2, ln2g, ln2b]
    vec = lvec_ref[0]                          # (8, VD) f32
    bqkv = vec[0:1, :3 * D]
    bo, ln1g, ln1b = vec[1:2, :D], vec[2:3, :D], vec[3:4, :D]
    b1 = vec[4:5, :F]
    b2, ln2g, ln2b = vec[5:6, :D], vec[6:7, :D], vec[7:8, :D]

    # ---- fused QKV projection for all B*S rows (scale folded into Wq/bq).
    qkv = jnp.dot(x.astype(jnp.bfloat16), wqkv_ref[0],
                  preferred_element_type=jnp.float32) + bqkv        # (N, 3D)
    qkv_bf = qkv.astype(jnp.bfloat16)                               # one cast

    def heads(col0):                            # (N, 3D) -> (H, N, hd)
        # TODO(synk): replace slices+concat with a single head-major relayout
        # once rank-3 major-dim transposes lower cleanly; kept for robustness.
        return jnp.concatenate(
            [qkv_bf[None, :, col0 + h * hd: col0 + (h + 1) * hd]
             for h in range(H)], axis=0)

    q3, k3, v3 = heads(0), heads(D), heads(2 * D)

    # ---- head-batched attention over the flattened B*S axis; cross-batch
    #      pairs are removed with the additive mask.
    s = jnp.einsum('hqd,hkd->hqk', q3, k3,
                   preferred_element_type=jnp.float32) + mask_ref[...]
    s = s - jnp.max(s, axis=-1, keepdims=True)
    p = jnp.exp(s)
    p = p * pl.reciprocal(jnp.sum(p, axis=-1, keepdims=True), approx=True)
    ctx = jnp.einsum('hqk,hkd->hqd', p.astype(jnp.bfloat16), v3,
                     preferred_element_type=jnp.float32)            # (H, N, hd)

    # ---- merge heads once, single packed (D, D) output projection.
    ctx2 = jnp.concatenate([ctx[h] for h in range(H)], axis=-1)     # (N, D)
    attn = jnp.dot(ctx2.astype(jnp.bfloat16), wo_ref[0],
                   preferred_element_type=jnp.float32) + bo

    # dropout is identity in eval mode; post-norm residual.
    x1 = _layernorm(x + attn, ln1g, ln1b)

    # ---- feed-forward (relu), bf16 matmul inputs / f32 accumulation.
    h1 = jnp.maximum(
        jnp.dot(x1.astype(jnp.bfloat16), w1_ref[0],
                preferred_element_type=jnp.float32) + b1, 0.0)       # (N, F)
    ff = jnp.dot(h1.astype(jnp.bfloat16), w2_ref[0],
                 preferred_element_type=jnp.float32) + b2            # (N, D)
    x2 = _layernorm(x1 + ff, ln2g, ln2b)

    act_ref[...] = x2

    # ---- last layer: final encoder LayerNorm + attention pooling; write one
    #      lane-dense (B, D) slab.
    @pl.when(layer == n_layers - 1)
    def _():
        hv = hvec_ref[...]                       # (4, D): lnfg, lnfb, wa, [ba]
        lnfg, lnfb, wa = hv[0:1, :], hv[1:2, :], hv[2:3, :]
        ba = hv[3:4, 0:1]                        # (1, 1)
        xf = _layernorm(x2, lnfg, lnfb)          # (N, D)
        logit = jnp.sum(xf * wa, axis=-1, keepdims=True) + ba        # (N, 1)
        lg3 = logit.reshape(B, S, 1)
        xf3 = xf.reshape(B, S, D)
        m = jnp.max(lg3, axis=1, keepdims=True)
        e = jnp.exp(lg3 - m)
        wgt = e * pl.reciprocal(jnp.sum(e, axis=1, keepdims=True), approx=True)
        pooled_ref[...] = jnp.sum(xf3 * wgt, axis=1)                 # (B, D)


# ----------------------------------------------------------------------------
# Wrapper: embeddings (plain-JAX gather glue) -> fused kernel -> tiny head.
# ----------------------------------------------------------------------------
def simple_transformer_forward(token_ids, packed, num_heads):
    B, S = token_ids.shape
    D = packed["tok_emb"].shape[1]
    L, NV, VD = packed["lvec"].shape
    F = packed["w1"].shape[2]
    N = B * S

    # TODO(synk): embedding row-gather stays in plain JAX (no rectangular
    # BlockSpec equivalent; a DMA-gather kernel is not worth it at these sizes).
    x = (packed["tok_emb"][token_ids]
         + packed["pos_emb"][:S][None]).astype(jnp.float32).reshape(N, D)

    # additive cross-batch mask for flattened-batch attention (constant at jit)
    row_b = jnp.repeat(jnp.arange(B), S)
    attn_mask = jnp.where(row_b[:, None] == row_b[None, :],
                          0.0, -1e9).astype(jnp.float32)             # (N, N)

    pooled = pl.pallas_call(
        functools.partial(fused_encoder_kernel, num_heads, B, S),
        out_shape=jax.ShapeDtypeStruct((B, D), jnp.float32),
        grid=(L,),
        in_specs=[
            pl.BlockSpec((N, D), lambda l: (0, 0)),            # x (fetched once)
            pl.BlockSpec((N, N), lambda l: (0, 0)),            # batch mask
            pl.BlockSpec((1, D, 3 * D), lambda l: (l, 0, 0)),  # wqkv
            pl.BlockSpec((1, D, D), lambda l: (l, 0, 0)),      # wo (packed D,D)
            pl.BlockSpec((1, D, F), lambda l: (l, 0, 0)),      # w1
            pl.BlockSpec((1, F, D), lambda l: (l, 0, 0)),      # w2
            pl.BlockSpec((1, NV, VD), lambda l: (l, 0, 0)),    # packed layer vecs
            pl.BlockSpec((4, D), lambda l: (0, 0)),            # packed head vecs
        ],
        out_specs=pl.BlockSpec((B, D), lambda l: (0, 0)),
        scratch_shapes=[pltpu.VMEM((N, D), jnp.float32)],      # resident activations
        compiler_params=pltpu.CompilerParams(
            dimension_semantics=("arbitrary",),
            vmem_limit_bytes=48 * 1024 * 1024),
    )(x, attn_mask, packed["wqkv"], packed["wo"], packed["w1"], packed["w2"],
      packed["lvec"], packed["hvec"])

    # Output head Linear(D, 1) + sigmoid: O(B*D), plain JAX (avoids a
    # lane-sparse (1, 1) kernel output block).
    logit = pooled @ packed["wout"].T + packed["bout"]         # (B, 1)
    return jax.nn.sigmoid(logit)


# ----------------------------------------------------------------------------
# Parameter init (natural layout, f32) + one-time pack into kernel layout.
# ----------------------------------------------------------------------------
def init_params(key, vocab_size, max_len, d_model, num_heads, num_layers,
                dim_feedforward):
    keys = iter(jax.random.split(key, 2 + 8 * num_layers + 4))

    def normal(shape, scale=0.05):
        return (jax.random.normal(next(keys), shape) * scale).astype(jnp.float32)

    params = {"tok_emb": normal((vocab_size, d_model)),
              "pos_emb": normal((max_len, d_model)),
              "layers": [], "head": {}}
    for _ in range(num_layers):
        params["layers"].append({
            "wqkv": normal((d_model, 3 * d_model)),
            "bqkv": normal((3 * d_model,)),
            "wo": normal((d_model, d_model)),
            "bo": normal((d_model,)),
            "ln1g": jnp.ones((d_model,), jnp.float32),
            "ln1b": jnp.zeros((d_model,), jnp.float32),
            "w1": normal((d_model, dim_feedforward)),
            "b1": normal((dim_feedforward,)),
            "w2": normal((dim_feedforward, d_model)),
            "b2": normal((d_model,)),
            "ln2g": jnp.ones((d_model,), jnp.float32),
            "ln2b": jnp.zeros((d_model,), jnp.float32),
        })
    params["head"] = {
        "lnfg": jnp.ones((d_model,), jnp.float32),
        "lnfb": jnp.zeros((d_model,), jnp.float32),
        "wa": normal((d_model,)),
        "ba": normal(()),
        "wout": normal((d_model,)),
        "bout": normal(()),
    }
    return params


def pack_params(raw, num_heads):
    """One-time repack: bf16 matmul weights (1/sqrt(hd) folded into Q), packed
    per-layer vector stack (L, 8, VD) and head vector stack (4, D)."""
    D = raw["tok_emb"].shape[1]
    layers = raw["layers"]
    F = layers[0]["w1"].shape[1]
    hd = D // num_heads
    scale = 1.0 / math.sqrt(hd)
    VD = max(3 * D, F)
    col_scale = jnp.concatenate([jnp.full((D,), scale, jnp.float32),
                                 jnp.ones((2 * D,), jnp.float32)])

    def pad_row(v):
        v = v.astype(jnp.float32)
        return jnp.pad(v, (0, VD - v.shape[0]))

    wqkv, wo, w1, w2, lvec = [], [], [], [], []
    for lp in layers:
        wqkv.append((lp["wqkv"] * col_scale[None, :]).astype(jnp.bfloat16))
        wo.append(lp["wo"].astype(jnp.bfloat16))
        w1.append(lp["w1"].astype(jnp.bfloat16))
        w2.append(lp["w2"].astype(jnp.bfloat16))
        lvec.append(jnp.stack([
            pad_row(lp["bqkv"] * col_scale),
            pad_row(lp["bo"]), pad_row(lp["ln1g"]), pad_row(lp["ln1b"]),
            pad_row(lp["b1"]), pad_row(lp["b2"]),
            pad_row(lp["ln2g"]), pad_row(lp["ln2b"])]))
    head = raw["head"]
    ba_row = jnp.zeros((D,), jnp.float32).at[0].set(head["ba"])
    hvec = jnp.stack([head["lnfg"], head["lnfb"], head["wa"], ba_row])
    return {
        "tok_emb": raw["tok_emb"], "pos_emb": raw["pos_emb"],
        "wqkv": jnp.stack(wqkv),           # (L, D, 3D) bf16
        "wo": jnp.stack(wo),               # (L, D, D)  bf16
        "w1": jnp.stack(w1),               # (L, D, F)  bf16
        "w2": jnp.stack(w2),               # (L, F, D)  bf16
        "lvec": jnp.stack(lvec),           # (L, 8, VD) f32
        "hvec": hvec,                      # (4, D)     f32
        "wout": head["wout"].reshape(1, D),
        "bout": head["bout"].reshape(1, 1),
    }


# ----------------------------------------------------------------------------
# Pure-JAX f32 reference (natural-layout params) for correctness.
# ----------------------------------------------------------------------------
def reference_forward(token_ids, raw, num_heads):
    B, S = token_ids.shape
    x = (raw["tok_emb"][token_ids]
         + raw["pos_emb"][:S][None]).astype(jnp.float32)
    D = x.shape[-1]
    H = num_heads
    hd = D // H
    for lp in raw["layers"]:
        qkv = x @ lp["wqkv"] + lp["bqkv"]
        q, k, v = qkv[..., :D], qkv[..., D:2 * D], qkv[..., 2 * D:]
        q = q.reshape(B, S, H, hd).transpose(0, 2, 1, 3) / math.sqrt(hd)
        k = k.reshape(B, S, H, hd).transpose(0, 2, 1, 3)
        v = v.reshape(B, S, H, hd).transpose(0, 2, 1, 3)
        p = jax.nn.softmax(q @ k.transpose(0, 1, 3, 2), axis=-1)
        a = (p @ v).transpose(0, 2, 1, 3).reshape(B, S, D)
        x = _layernorm(x + a @ lp["wo"] + lp["bo"], lp["ln1g"], lp["ln1b"])
        ff = jnp.maximum(x @ lp["w1"] + lp["b1"], 0.0) @ lp["w2"] + lp["b2"]
        x = _layernorm(x + ff, lp["ln2g"], lp["ln2b"])
    hp = raw["head"]
    x = _layernorm(x, hp["lnfg"], hp["lnfb"])
    logits = x @ hp["wa"][:, None] + hp["ba"]              # (B, S, 1)
    w = jax.nn.softmax(logits, axis=1)
    pooled = jnp.sum(x * w, axis=1)                        # (B, D)
    out = pooled @ hp["wout"][:, None] + hp["bout"]
    return jax.nn.sigmoid(out)


if __name__ == "__main__":
    # small, shape-consistent config
    B, S = 2, 8
    d_model, num_heads, num_layers, dim_feedforward = 32, 4, 2, 64
    vocab_size, max_len = 16, 512

    key = jax.random.PRNGKey(0)
    k_tok, k_param = jax.random.split(key)
    token_ids = jax.random.randint(k_tok, (B, S), 0, vocab_size, dtype=jnp.int32)
    raw = init_params(k_param, vocab_size, max_len, d_model, num_heads,
                      num_layers, dim_feedforward)
    packed = pack_params(raw, num_heads)      # one-time weight repack (outside jit)

    forward = jax.jit(functools.partial(simple_transformer_forward,
                                        num_heads=num_heads))
    out = jax.block_until_ready(forward(token_ids, packed))

    ref = reference_forward(token_ids, raw, num_heads)
    assert out.shape == (B, 1)
    # bf16 matmul inputs + approx reciprocals vs. pure-f32 reference
    assert jnp.allclose(out, ref, atol=2e-2, rtol=2e-2), (out, ref)

    print("KERNEL_OK")
</pallas_src>

<mosaic_0001>
module attributes {stable_mosaic.version = 11 : i64} {
  func.func @fused_encoder_kernel(%arg0: i32, %arg1: memref<16x32xf32, #tpu.memory_space<vmem>>, %arg2: memref<16x16xf32, #tpu.memory_space<vmem>>, %arg3: memref<1x32x96xbf16, #tpu.memory_space<vmem>>, %arg4: memref<1x32x32xbf16, #tpu.memory_space<vmem>>, %arg5: memref<1x32x64xbf16, #tpu.memory_space<vmem>>, %arg6: memref<1x64x32xbf16, #tpu.memory_space<vmem>>, %arg7: memref<1x8x96xf32, #tpu.memory_space<vmem>>, %arg8: memref<4x32xf32, #tpu.memory_space<vmem>>, %arg9: memref<2x32xf32, #tpu.memory_space<vmem>>, %arg10: memref<16x32xf32, #tpu.memory_space<vmem>>) attributes {dimension_semantics = [#tpu.dimension_semantics<arbitrary>], iteration_bounds = array<i64: 2>, scalar_prefetch = 0 : i64, scratch_operands = 1 : i64, tpu.core_type = #tpu.core_type<tc>, window_params = [{pipeline_mode = #tpu.pipeline_mode<synchronous>, transform_indices = @transform_0, window_bounds = array<i64: 16, 32>}, {pipeline_mode = #tpu.pipeline_mode<synchronous>, transform_indices = @transform_1, window_bounds = array<i64: 16, 16>}, {transform_indices = @transform_2, window_bounds = array<i64: 1, 32, 96>}, {transform_indices = @transform_3, window_bounds = array<i64: 1, 32, 32>}, {transform_indices = @transform_4, window_bounds = array<i64: 1, 32, 64>}, {transform_indices = @transform_5, window_bounds = array<i64: 1, 64, 32>}, {transform_indices = @transform_6, window_bounds = array<i64: 1, 8, 96>}, {pipeline_mode = #tpu.pipeline_mode<synchronous>, transform_indices = @transform_7, window_bounds = array<i64: 4, 32>}, {pipeline_mode = #tpu.pipeline_mode<synchronous>, transform_indices = @transform_8, window_bounds = array<i64: 2, 32>}]} {
    %c0_i32 = arith.constant 0 : i32
    %0 = arith.cmpi eq, %arg0, %c0_i32 : i32
    %1 = arith.extui %0 : i1 to i32
    %c0_i32_0 = arith.constant 0 : i32
    %2 = arith.cmpi ne, %1, %c0_i32_0 : i32
    scf.if %2 {
      %c0_40 = arith.constant 0 : index
      %c0_41 = arith.constant 0 : index
      %144 = vector.load %arg1[%c0_40, %c0_41] : memref<16x32xf32, #tpu.memory_space<vmem>>, vector<16x32xf32>
      %c0_42 = arith.constant 0 : index
      %c0_43 = arith.constant 0 : index
      %145 = vector.load %arg10[%c0_42, %c0_43] : memref<16x32xf32, #tpu.memory_space<vmem>>, vector<16x32xf32>
      tpu.vector_store %arg10[%c0_42, %c0_43], %144 {strides = array<i32>} : memref<16x32xf32, #tpu.memory_space<vmem>>, vector<16x32xf32>,
    } else {
    }
    %c0 = arith.constant 0 : index
    %c0_1 = arith.constant 0 : index
    %3 = vector.load %arg10[%c0, %c0_1] : memref<16x32xf32, #tpu.memory_space<vmem>>, vector<16x32xf32>
    %c0_2 = arith.constant 0 : index
    %c0_3 = arith.constant 0 : index
    %c0_4 = arith.constant 0 : index
    %4 = vector.load %arg7[%c0_2, %c0_3, %c0_4] : memref<1x8x96xf32, #tpu.memory_space<vmem>>, vector<1x8x96xf32>
    %5 = vector.shape_cast %4 : vector<1x8x96xf32> to vector<8x96xf32>
    %6 = vector.extract_strided_slice %5 {offsets = [0, 0], sizes = [1, 96], strides = [1, 1]} : vector<8x96xf32> to vector<1x96xf32>
    %7 = vector.extract_strided_slice %5 {offsets = [1, 0], sizes = [1, 32], strides = [1, 1]} : vector<8x96xf32> to vector<1x32xf32>
    %8 = vector.extract_strided_slice %5 {offsets = [2, 0], sizes = [1, 32], strides = [1, 1]} : vector<8x96xf32> to vector<1x32xf32>
    %9 = vector.extract_strided_slice %5 {offsets = [3, 0], sizes = [1, 32], strides = [1, 1]} : vector<8x96xf32> to vector<1x32xf32>
    %10 = vector.extract_strided_slice %5 {offsets = [4, 0], sizes = [1, 64], strides = [1, 1]} : vector<8x96xf32> to vector<1x64xf32>
    %11 = vector.extract_strided_slice %5 {offsets = [5, 0], sizes = [1, 32], strides = [1, 1]} : vector<8x96xf32> to vector<1x32xf32>
    %12 = vector.extract_strided_slice %5 {offsets = [6, 0], sizes = [1, 32], strides = [1, 1]} : vector<8x96xf32> to vector<1x32xf32>
    %13 = vector.extract_strided_slice %5 {offsets = [7, 0], sizes = [1, 32], strides = [1, 1]} : vector<8x96xf32> to vector<1x32xf32>
    %14 = arith.truncf %3 : vector<16x32xf32> to vector<16x32xbf16>
    %c0_5 = arith.constant 0 : index
    %c0_6 = arith.constant 0 : index
    %c0_7 = arith.constant 0 : index
    %15 = vector.load %arg3[%c0_5, %c0_6, %c0_7] : memref<1x32x96xbf16, #tpu.memory_space<vmem>>, vector<1x32x96xbf16>
    %16 = vector.shape_cast %15 : vector<1x32x96xbf16> to vector<32x96xbf16>
    %cst = arith.constant dense<0.000000e+00> : vector<16x96xf32>
    %17 = tpu.matmul %14, %16, %cst {dimension_numbers = #tpu.dot_dimension_numbers<[1], [0], [0], [1], [0, 0, 1, 1], [], []>} : vector<16x32xbf16>, vector<32x96xbf16>, vector<16x96xf32> -> vector<16x96xf32>
    %18 = vector.broadcast %6 : vector<1x96xf32> to vector<16x96xf32>
    %19 = arith.addf %17, %18 : vector<16x96xf32>
    %20 = arith.truncf %19 : vector<16x96xf32> to vector<16x96xbf16>
    %21 = vector.extract_strided_slice %20 {offsets = [0, 0], sizes = [16, 8], strides = [1, 1]} : vector<16x96xbf16> to vector<16x8xbf16>
    %22 = vector.shape_cast %21 : vector<16x8xbf16> to vector<1x16x8xbf16>
    %23 = vector.extract_strided_slice %20 {offsets = [0, 8], sizes = [16, 8], strides = [1, 1]} : vector<16x96xbf16> to vector<16x8xbf16>
    %24 = vector.shape_cast %23 : vector<16x8xbf16> to vector<1x16x8xbf16>
    %25 = vector.extract_strided_slice %20 {offsets = [0, 16], sizes = [16, 8], strides = [1, 1]} : vector<16x96xbf16> to vector<16x8xbf16>
    %26 = vector.shape_cast %25 : vector<16x8xbf16> to vector<1x16x8xbf16>
    %27 = vector.extract_strided_slice %20 {offsets = [0, 24], sizes = [16, 8], strides = [1, 1]} : vector<16x96xbf16> to vector<16x8xbf16>
    %28 = vector.shape_cast %27 : vector<16x8xbf16> to vector<1x16x8xbf16>
    %29 = tpu.concatenate %22, %24, %26, %28 in 0 : vector<1x16x8xbf16>, vector<1x16x8xbf16>, vector<1x16x8xbf16>, vector<1x16x8xbf16> -> vector<4x16x8xbf16>
    %30 = vector.extract_strided_slice %20 {offsets = [0, 32], sizes = [16, 8], strides = [1, 1]} : vector<16x96xbf16> to vector<16x8xbf16>
    %31 = vector.shape_cast %30 : vector<16x8xbf16> to vector<1x16x8xbf16>
    %32 = vector.extract_strided_slice %20 {offsets = [0, 40], sizes = [16, 8], strides = [1, 1]} : vector<16x96xbf16> to vector<16x8xbf16>
    %33 = vector.shape_cast %32 : vector<16x8xbf16> to vector<1x16x8xbf16>
    %34 = vector.extract_strided_slice %20 {offsets = [0, 48], sizes = [16, 8], strides = [1, 1]} : vector<16x96xbf16> to vector<16x8xbf16>
    %35 = vector.shape_cast %34 : vector<16x8xbf16> to vector<1x16x8xbf16>
    %36 = vector.extract_strided_slice %20 {offsets = [0, 56], sizes = [16, 8], strides = [1, 1]} : vector<16x96xbf16> to vector<16x8xbf16>
    %37 = vector.shape_cast %36 : vector<16x8xbf16> to vector<1x16x8xbf16>
    %38 = tpu.concatenate %31, %33, %35, %37 in 0 : vector<1x16x8xbf16>, vector<1x16x8xbf16>, vector<1x16x8xbf16>, vector<1x16x8xbf16> -> vector<4x16x8xbf16>
    %39 = vector.extract_strided_slice %20 {offsets = [0, 64], sizes = [16, 8], strides = [1, 1]} : vector<16x96xbf16> to vector<16x8xbf16>
    %40 = vector.shape_cast %39 : vector<16x8xbf16> to vector<1x16x8xbf16>
    %41 = vector.extract_strided_slice %20 {offsets = [0, 72], sizes = [16, 8], strides = [1, 1]} : vector<16x96xbf16> to vector<16x8xbf16>
    %42 = vector.shape_cast %41 : vector<16x8xbf16> to vector<1x16x8xbf16>
    %43 = vector.extract_strided_slice %20 {offsets = [0, 80], sizes = [16, 8], strides = [1, 1]} : vector<16x96xbf16> to vector<16x8xbf16>
    %44 = vector.shape_cast %43 : vector<16x8xbf16> to vector<1x16x8xbf16>
    %45 = vector.extract_strided_slice %20 {offsets = [0, 88], sizes = [16, 8], strides = [1, 1]} : vector<16x96xbf16> to vector<16x8xbf16>
    %46 = vector.shape_cast %45 : vector<16x8xbf16> to vector<1x16x8xbf16>
    %47 = tpu.concatenate %40, %42, %44, %46 in 0 : vector<1x16x8xbf16>, vector<1x16x8xbf16>, vector<1x16x8xbf16>, vector<1x16x8xbf16> -> vector<4x16x8xbf16>
    "tpu.trace_start"() <{level = 10 : i32, message = "hqd,hkd->hqk"}> : () -> ()
    %cst_8 = arith.constant dense<0.000000e+00> : vector<4x16x16xf32>
    %48 = tpu.matmul %29, %38, %cst_8 {dimension_numbers = #tpu.dot_dimension_numbers<[2], [2], [1], [1], [0, 0, 0, 1, 1, 1], [0], [0]>} : vector<4x16x8xbf16>, vector<4x16x8xbf16>, vector<4x16x16xf32> -> vector<4x16x16xf32>
    "tpu.trace_stop"() : () -> ()
    %c0_9 = arith.constant 0 : index
    %c0_10 = arith.constant 0 : index
    %49 = vector.load %arg2[%c0_9, %c0_10] : memref<16x16xf32, #tpu.memory_space<vmem>>, vector<16x16xf32>
    %50 = vector.shape_cast %49 : vector<16x16xf32> to vector<1x16x16xf32>
    %51 = vector.broadcast %50 : vector<1x16x16xf32> to vector<4x16x16xf32>
    %52 = arith.addf %48, %51 : vector<4x16x16xf32>
    %cst_11 = arith.constant dense<0xFF800000> : vector<4x16xf32>
    %53 = vector.multi_reduction <maximumf>, %52, %cst_11 [2] : vector<4x16x16xf32> to vector<4x16xf32>
    %54 = vector.shape_cast %53 : vector<4x16xf32> to vector<4x16x1xf32>
    %55 = vector.broadcast %54 : vector<4x16x1xf32> to vector<4x16x16xf32>
    %56 = arith.subf %52, %55 : vector<4x16x16xf32>
    %57 = math.exp %56 : vector<4x16x16xf32>
    %cst_12 = arith.constant dense<0.000000e+00> : vector<4x16xf32>
    %58 = vector.multi_reduction <add>, %57, %cst_12 [2] : vector<4x16x16xf32> to vector<4x16xf32>
    %59 = vector.shape_cast %58 : vector<4x16xf32> to vector<4x16x1xf32>
    %60 = tpu.reciprocal %59 {approx = true} : vector<4x16x1xf32> -> vector<4x16x1xf32>
    %61 = vector.broadcast %60 : vector<4x16x1xf32> to vector<4x16x16xf32>
    %62 = arith.mulf %57, %61 : vector<4x16x16xf32>
    %63 = arith.truncf %62 : vector<4x16x16xf32> to vector<4x16x16xbf16>
    "tpu.trace_start"() <{level = 10 : i32, message = "hqk,hkd->hqd"}> : () -> ()
    %cst_13 = arith.constant dense<0.000000e+00> : vector<4x16x8xf32>
    %64 = tpu.matmul %63, %47, %cst_13 {dimension_numbers = #tpu.dot_dimension_numbers<[2], [1], [1], [2], [0, 0, 0, 1, 1, 2], [0], [0]>} : vector<4x16x16xbf16>, vector<4x16x8xbf16>, vector<4x16x8xf32> -> vector<4x16x8xf32>
    "tpu.trace_stop"() : () -> ()
    %65 = vector.extract_strided_slice %64 {offsets = [0, 0, 0], sizes = [1, 16, 8], strides = [1, 1, 1]} : vector<4x16x8xf32> to vector<1x16x8xf32>
    %66 = vector.shape_cast %65 : vector<1x16x8xf32> to vector<16x8xf32>
    %67 = vector.extract_strided_slice %64 {offsets = [1, 0, 0], sizes = [1, 16, 8], strides = [1, 1, 1]} : vector<4x16x8xf32> to vector<1x16x8xf32>
    %68 = vector.shape_cast %67 : vector<1x16x8xf32> to vector<16x8xf32>
    %69 = vector.extract_strided_slice %64 {offsets = [2, 0, 0], sizes = [1, 16, 8], strides = [1, 1, 1]} : vector<4x16x8xf32> to vector<1x16x8xf32>
    %70 = vector.shape_cast %69 : vector<1x16x8xf32> to vector<16x8xf32>
    %71 = vector.extract_strided_slice %64 {offsets = [3, 0, 0], sizes = [1, 16, 8], strides = [1, 1, 1]} : vector<4x16x8xf32> to vector<1x16x8xf32>
    %72 = vector.shape_cast %71 : vector<1x16x8xf32> to vector<16x8xf32>
    %73 = tpu.concatenate %66, %68, %70, %72 in 1 : vector<16x8xf32>, vector<16x8xf32>, vector<16x8xf32>, vector<16x8xf32> -> vector<16x32xf32>
    %74 = arith.truncf %73 : vector<16x32xf32> to vector<16x32xbf16>
    %c0_14 = arith.constant 0 : index
    %c0_15 = arith.constant 0 : index
    %c0_16 = arith.constant 0 : index
    %75 = vector.load %arg4[%c0_14, %c0_15, %c0_16] : memref<1x32x32xbf16, #tpu.memory_space<vmem>>, vector<1x32x32xbf16>
    %76 = vector.shape_cast %75 : vector<1x32x32xbf16> to vector<32x32xbf16>
    %cst_17 = arith.constant dense<0.000000e+00> : vector<16x32xf32>
    %77 = tpu.matmul %74, %76, %cst_17 {dimension_numbers = #tpu.dot_dimension_numbers<[1], [0], [0], [1], [0, 0, 1, 1], [], []>} : vector<16x32xbf16>, vector<32x32xbf16>, vector<16x32xf32> -> vector<16x32xf32>
    %78 = vector.broadcast %7 : vector<1x32xf32> to vector<16x32xf32>
    %79 = arith.addf %77, %78 : vector<16x32xf32>
    %80 = arith.addf %3, %79 : vector<16x32xf32>
    %cst_18 = arith.constant dense<0.000000e+00> : vector<16xf32>
    %81 = vector.multi_reduction <add>, %80, %cst_18 [1] : vector<16x32xf32> to vector<16xf32>
    %82 = vector.shape_cast %81 : vector<16xf32> to vector<16x1xf32>
    %cst_19 = arith.constant 3.200000e+01 : f32
    %83 = vector.broadcast %cst_19 : f32 to vector<16x1xf32>
    %84 = arith.divf %82, %83 : vector<16x1xf32>
    %85 = vector.broadcast %84 : vector<16x1xf32> to vector<16x32xf32>
    %86 = arith.subf %80, %85 : vector<16x32xf32>
    %87 = arith.mulf %86, %86 : vector<16x32xf32>
    %cst_20 = arith.constant dense<0.000000e+00> : vector<16xf32>
    %88 = vector.multi_reduction <add>, %87, %cst_20 [1] : vector<16x32xf32> to vector<16xf32>
    %89 = vector.shape_cast %88 : vector<16xf32> to vector<16x1xf32>
    %cst_21 = arith.constant 3.200000e+01 : f32
    %90 = vector.broadcast %cst_21 : f32 to vector<16x1xf32>
    %91 = arith.divf %89, %90 : vector<16x1xf32>
    %92 = vector.broadcast %84 : vector<16x1xf32> to vector<16x32xf32>
    %93 = arith.subf %80, %92 : vector<16x32xf32>
    %cst_22 = arith.constant 9.99999974E-6 : f32
    %94 = vector.broadcast %cst_22 : f32 to vector<16x1xf32>
    %95 = arith.addf %91, %94 : vector<16x1xf32>
    %96 = math.rsqrt %95 : vector<16x1xf32>
    %97 = vector.broadcast %96 : vector<16x1xf32> to vector<16x32xf32>
    %98 = arith.mulf %93, %97 : vector<16x32xf32>
    %99 = vector.broadcast %8 : vector<1x32xf32> to vector<16x32xf32>
    %100 = arith.mulf %98, %99 : vector<16x32xf32>
    %101 = vector.broadcast %9 : vector<1x32xf32> to vector<16x32xf32>
    %102 = arith.addf %100, %101 : vector<16x32xf32>
    %103 = arith.truncf %102 : vector<16x32xf32> to vector<16x32xbf16>
    %c0_23 = arith.constant 0 : index
    %c0_24 = arith.constant 0 : index
    %c0_25 = arith.constant 0 : index
    %104 = vector.load %arg5[%c0_23, %c0_24, %c0_25] : memref<1x32x64xbf16, #tpu.memory_space<vmem>>, vector<1x32x64xbf16>
    %105 = vector.shape_cast %104 : vector<1x32x64xbf16> to vector<32x64xbf16>
    %cst_26 = arith.constant dense<0.000000e+00> : vector<16x64xf32>
    %106 = tpu.matmul %103, %105, %cst_26 {dimension_numbers = #tpu.dot_dimension_numbers<[1], [0], [0], [1], [0, 0, 1, 1], [], []>} : vector<16x32xbf16>, vector<32x64xbf16>, vector<16x64xf32> -> vector<16x64xf32>
    %107 = vector.broadcast %10 : vector<1x64xf32> to vector<16x64xf32>
    %108 = arith.addf %106, %107 : vector<16x64xf32>
    %cst_27 = arith.constant 0.000000e+00 : f32
    %109 = vector.broadcast %cst_27 : f32 to vector<16x64xf32>
    %110 = arith.maximumf %108, %109 : vector<16x64xf32>
    %111 = arith.truncf %110 : vector<16x64xf32> to vector<16x64xbf16>
    %c0_28 = arith.constant 0 : index
    %c0_29 = arith.constant 0 : index
    %c0_30 = arith.constant 0 : index
    %112 = vector.load %arg6[%c0_28, %c0_29, %c0_30] : memref<1x64x32xbf16, #tpu.memory_space<vmem>>, vector<1x64x32xbf16>
    %113 = vector.shape_cast %112 : vector<1x64x32xbf16> to vector<64x32xbf16>
    %cst_31 = arith.constant dense<0.000000e+00> : vector<16x32xf32>
    %114 = tpu.matmul %111, %113, %cst_31 {dimension_numbers = #tpu.dot_dimension_numbers<[1], [0], [0], [1], [0, 0, 1, 1], [], []>} : vector<16x64xbf16>, vector<64x32xbf16>, vector<16x32xf32> -> vector<16x32xf32>
    %115 = vector.broadcast %11 : vector<1x32xf32> to vector<16x32xf32>
    %116 = arith.addf %114, %115 : vector<16x32xf32>
    %117 = arith.addf %102, %116 : vector<16x32xf32>
    %cst_32 = arith.constant dense<0.000000e+00> : vector<16xf32>
    %118 = vector.multi_reduction <add>, %117, %cst_32 [1] : vector<16x32xf32> to vector<16xf32>
    %119 = vector.shape_cast %118 : vector<16xf32> to vector<16x1xf32>
    %cst_33 = arith.constant 3.200000e+01 : f32
    %120 = vector.broadcast %cst_33 : f32 to vector<16x1xf32>
    %121 = arith.divf %119, %120 : vector<16x1xf32>
    %122 = vector.broadcast %121 : vector<16x1xf32> to vector<16x32xf32>
    %123 = arith.subf %117, %122 : vector<16x32xf32>
    %124 = arith.mulf %123, %123 : vector<16x32xf32>
    %cst_34 = arith.constant dense<0.000000e+00> : vector<16xf32>
    %125 = vector.multi_reduction <add>, %124, %cst_34 [1] : vector<16x32xf32> to vector<16xf32>
    %126 = vector.shape_cast %125 : vector<16xf32> to vector<16x1xf32>
    %cst_35 = arith.constant 3.200000e+01 : f32
    %127 = vector.broadcast %cst_35 : f32 to vector<16x1xf32>
    %128 = arith.divf %126, %127 : vector<16x1xf32>
    %129 = vector.broadcast %121 : vector<16x1xf32> to vector<16x32xf32>
    %130 = arith.subf %117, %129 : vector<16x32xf32>
    %cst_36 = arith.constant 9.99999974E-6 : f32
    %131 = vector.broadcast %cst_36 : f32 to vector<16x1xf32>
    %132 = arith.addf %128, %131 : vector<16x1xf32>
    %133 = math.rsqrt %132 : vector<16x1xf32>
    %134 = vector.broadcast %133 : vector<16x1xf32> to vector<16x32xf32>
    %135 = arith.mulf %130, %134 : vector<16x32xf32>
    %136 = vector.broadcast %12 : vector<1x32xf32> to vector<16x32xf32>
    %137 = arith.mulf %135, %136 : vector<16x32xf32>
    %138 = vector.broadcast %13 : vector<1x32xf32> to vector<16x32xf32>
    %139 = arith.addf %137, %138 : vector<16x32xf32>
    %c0_37 = arith.constant 0 : index
    %c0_38 = arith.constant 0 : index
    %140 = vector.load %arg10[%c0_37, %c0_38] : memref<16x32xf32, #tpu.memory_space<vmem>>, vector<16x32xf32>
    tpu.vector_store %arg10[%c0_37, %c0_38], %139 {strides = array<i32>} : memref<16x32xf32, #tpu.memory_space<vmem>>, vector<16x32xf32>,
    %c1_i32 = arith.constant 1 : i32
    %141 = arith.cmpi eq, %arg0, %c1_i32 : i32
    %142 = arith.extui %141 : i1 to i32
    %c0_i32_39 = arith.constant 0 : i32
    %143 = arith.cmpi ne, %142, %c0_i32_39 : i32
    scf.if %143 {
      %c0_40 = arith.constant 0 : index
      %c0_41 = arith.constant 0 : index
      %144 = vector.load %arg8[%c0_40, %c0_41] : memref<4x32xf32, #tpu.memory_space<vmem>>, vector<4x32xf32>
      %145 = vector.extract_strided_slice %144 {offsets = [0, 0], sizes = [1, 32], strides = [1, 1]} : vector<4x32xf32> to vector<1x32xf32>
      %146 = vector.extract_strided_slice %144 {offsets = [1, 0], sizes = [1, 32], strides = [1, 1]} : vector<4x32xf32> to vector<1x32xf32>
      %147 = vector.extract_strided_slice %144 {offsets = [2, 0], sizes = [1, 32], strides = [1, 1]} : vector<4x32xf32> to vector<1x32xf32>
      %148 = vector.extract_strided_slice %144 {offsets = [3, 0], sizes = [1, 1], strides = [1, 1]} : vector<4x32xf32> to vector<1x1xf32>
      %cst_42 = arith.constant dense<0.000000e+00> : vector<16xf32>
      %149 = vector.multi_reduction <add>, %139, %cst_42 [1] : vector<16x32xf32> to vector<16xf32>
      %150 = vector.shape_cast %149 : vector<16xf32> to vector<16x1xf32>
      %cst_43 = arith.constant 3.200000e+01 : f32
      %151 = vector.broadcast %cst_43 : f32 to vector<16x1xf32>
      %152 = arith.divf %150, %151 : vector<16x1xf32>
      %153 = vector.broadcast %152 : vector<16x1xf32> to vector<16x32xf32>
      %154 = arith.subf %139, %153 : vector<16x32xf32>
      %155 = arith.mulf %154, %154 : vector<16x32xf32>
      %cst_44 = arith.constant dense<0.000000e+00> : vector<16xf32>
      %156 = vector.multi_reduction <add>, %155, %cst_44 [1] : vector<16x32xf32> to vector<16xf32>
      %157 = vector.shape_cast %156 : vector<16xf32> to vector<16x1xf32>
      %cst_45 = arith.constant 3.200000e+01 : f32
      %158 = vector.broadcast %cst_45 : f32 to vector<16x1xf32>
      %159 = arith.divf %157, %158 : vector<16x1xf32>
      %160 = vector.broadcast %152 : vector<16x1xf32> to vector<16x32xf32>
      %161 = arith.subf %139, %160 : vector<16x32xf32>
      %cst_46 = arith.constant 9.99999974E-6 : f32
      %162 = vector.broadcast %cst_46 : f32 to vector<16x1xf32>
      %163 = arith.addf %159, %162 : vector<16x1xf32>
      %164 = math.rsqrt %163 : vector<16x1xf32>
      %165 = vector.broadcast %164 : vector<16x1xf32> to vector<16x32xf32>
      %166 = arith.mulf %161, %165 : vector<16x32xf32>
      %167 = vector.broadcast %145 : vector<1x32xf32> to vector<16x32xf32>
      %168 = arith.mulf %166, %167 : vector<16x32xf32>
      %169 = vector.broadcast %146 : vector<1x32xf32> to vector<16x32xf32>
      %170 = arith.addf %168, %169 : vector<16x32xf32>
      %171 = vector.broadcast %147 : vector<1x32xf32> to vector<16x32xf32>
      %172 = arith.mulf %170, %171 : vector<16x32xf32>
      %cst_47 = arith.constant dense<0.000000e+00> : vector<16xf32>
      %173 = vector.multi_reduction <add>, %172, %cst_47 [1] : vector<16x32xf32> to vector<16xf32>
      %174 = vector.shape_cast %173 : vector<16xf32> to vector<16x1xf32>
      %175 = vector.broadcast %148 : vector<1x1xf32> to vector<16x1xf32>
      %176 = arith.addf %174, %175 : vector<16x1xf32>
      %177 = vector.shape_cast %176 : vector<16x1xf32> to vector<2x8x1xf32>
      %178 = vector.shape_cast %170 : vector<16x32xf32> to vector<2x8x32xf32>
      %cst_48 = arith.constant dense<0xFF800000> : vector<2x1xf32>
      %179 = vector.multi_reduction <maximumf>, %177, %cst_48 [1] : vector<2x8x1xf32> to vector<2x1xf32>
      %180 = vector.shape_cast %179 : vector<2x1xf32> to vector<2x1x1xf32>
      %181 = vector.broadcast %180 : vector<2x1x1xf32> to vector<2x8x1xf32>
      %182 = arith.subf %177, %181 : vector<2x8x1xf32>
      %183 = math.exp %182 : vector<2x8x1xf32>
      %cst_49 = arith.constant dense<0.000000e+00> : vector<2x1xf32>
      %184 = vector.multi_reduction <add>, %183, %cst_49 [1] : vector<2x8x1xf32> to vector<2x1xf32>
      %185 = vector.shape_cast %184 : vector<2x1xf32> to vector<2x1x1xf32>
      %186 = tpu.reciprocal %185 {approx = true} : vector<2x1x1xf32> -> vector<2x1x1xf32>
      %187 = vector.broadcast %186 : vector<2x1x1xf32> to vector<2x8x1xf32>
      %188 = arith.mulf %183, %187 : vector<2x8x1xf32>
      %189 = vector.broadcast %188 : vector<2x8x1xf32> to vector<2x8x32xf32>
      %190 = arith.mulf %178, %189 : vector<2x8x32xf32>
      %cst_50 = arith.constant dense<0.000000e+00> : vector<2x32xf32>
      %191 = vector.multi_reduction <add>, %190, %cst_50 [1] : vector<2x8x32xf32> to vector<2x32xf32>
      %c0_51 = arith.constant 0 : index
      %c0_52 = arith.constant 0 : index
      %192 = vector.load %arg9[%c0_51, %c0_52] : memref<2x32xf32, #tpu.memory_space<vmem>>, vector<2x32xf32>
      tpu.vector_store %arg9[%c0_51, %c0_52], %191 {strides = array<i32>} : memref<2x32xf32, #tpu.memory_space<vmem>>, vector<2x32xf32>,
    } else {
    }
    return
  }
  func.func @transform_0(%arg0: i32) -> (i32, i32) {
    %c0_i32 = arith.constant 0 : i32
    %c0_i32_0 = arith.constant 0 : i32
    %c0_i32_1 = arith.constant 0 : i32
    return %c0_i32, %c0_i32_0 : i32, i32
  }
  func.func @transform_1(%arg0: i32) -> (i32, i32) {
    %c0_i32 = arith.constant 0 : i32
    %c0_i32_0 = arith.constant 0 : i32
    %c0_i32_1 = arith.constant 0 : i32
    return %c0_i32, %c0_i32_0 : i32, i32
  }
  func.func @transform_2(%arg0: i32) -> (i32, i32, i32) {
    %c0_i32 = arith.constant 0 : i32
    %c0_i32_0 = arith.constant 0 : i32
    %c0_i32_1 = arith.constant 0 : i32
    return %arg0, %c0_i32, %c0_i32_0 : i32, i32, i32
  }
  func.func @transform_3(%arg0: i32) -> (i32, i32, i32) {
    %c0_i32 = arith.constant 0 : i32
    %c0_i32_0 = arith.constant 0 : i32
    %c0_i32_1 = arith.constant 0 : i32
    return %arg0, %c0_i32, %c0_i32_0 : i32, i32, i32
  }
  func.func @transform_4(%arg0: i32) -> (i32, i32, i32) {
    %c0_i32 = arith.constant 0 : i32
    %c0_i32_0 = arith.constant 0 : i32
    %c0_i32_1 = arith.constant 0 : i32
    return %arg0, %c0_i32, %c0_i32_0 : i32, i32, i32
  }
  func.func @transform_5(%arg0: i32) -> (i32, i32, i32) {
    %c0_i32 = arith.constant 0 : i32
    %c0_i32_0 = arith.constant 0 : i32
    %c0_i32_1 = arith.constant 0 : i32
    return %arg0, %c0_i32, %c0_i32_0 : i32, i32, i32
  }
  func.func @transform_6(%arg0: i32) -> (i32, i32, i32) {
    %c0_i32 = arith.constant 0 : i32
    %c0_i32_0 = arith.constant 0 : i32
    %c0_i32_1 = arith.constant 0 : i32
    return %arg0, %c0_i32, %c0_i32_0 : i32, i32, i32
  }
  func.func @transform_7(%arg0: i32) -> (i32, i32) {
    %c0_i32 = arith.constant 0 : i32
    %c0_i32_0 = arith.constant 0 : i32
    %c0_i32_1 = arith.constant 0 : i32
    return %c0_i32, %c0_i32_0 : i32, i32
  }
  func.func @transform_8(%arg0: i32) -> (i32, i32) {
    %c0_i32 = arith.constant 0 : i32
    %c0_i32_0 = arith.constant 0 : i32
    %c0_i32_1 = arith.constant 0 : i32
    return %c0_i32, %c0_i32_0 : i32, i32
  }
}

</mosaic_0001>

<bundles_post_ra>
// kernel: simple_transformer_forward.1
= control target key start
LH: loop header
LB: loop body
LE: loop exit
PB: predicated region body
PF: predicated region fallthrough
CT: control target
= control target key end

     0   :  { %s1791_s27 = smov 0   ;;  %s2033_s0 = inlined_call_operand.vmem [shape: f32[16,32], index: 0, kind: input, shape index: {}]   ;;  %s2034_s1 = inlined_call_operand.vmem [shape: f32[16,16], index: 1, kind: input, shape index: {}]   ;;  %s2035_s2 = inlined_call_operand.vmem [shape: bf16[2,32,96], index: 2, kind: input, shape index: {}]   ;;  %s2036_s3 = inlined_call_operand.vmem [shape: bf16[2,32,32], index: 3, kind: input, shape index: {}]   ;;  %s2037_s4 = inlined_call_operand.vmem [shape: bf16[2,32,64], index: 4, kind: input, shape index: {}]   ;;  %s2038_s5 = inlined_call_operand.vmem [shape: bf16[2,64,32], index: 5, kind: input, shape index: {}]   ;;  %s2039_s6 = inlined_call_operand.vmem [shape: f32[2,8,96], index: 6, kind: input, shape index: {}]   ;;  %s2040_s7 = inlined_call_operand.vmem [shape: f32[4,32], index: 7, kind: input, shape index: {}]   ;;  %s2041_s8 = inlined_call_operand.vmem [shape: f32[2,32], index: 8, kind: output, shape index: {}]  }
   0x1 LB: > { %s1797_s28 = sadd.s32 4294967295, %s1733_s27   ;;  %p1475_p0 = scmp.ge.s32.totalorder %s1733_s27, 1  ;;  %s1733_s27 = sphi %s1791_s27, %s18_s27  }
   0x2   : > { %p296_p1 = scmp.lt.s32.totalorder %s1733_s27, 3 }
   0x4   : > { %p297_p2 = pnand %p1475_p0, %p296_p1 }
   0x5   : > { %p344_p3 = scmp.lt.s32.totalorder (!%p297_p2), %s1797_s28, 1  ;;  %p1485_p4 = scmp.ne.s32.totalorder (!%p297_p2), %s1797_s28, 0 }
   0x6   : > { %300 = sbr.rel (%p297_p2) target bundleno = 3192 (0xc78), region = 52 }
   0xb   : > { %s345_s29 = scalar_select %p344_p3, %s1797_s28, 1 }
   0xd   : > { %s1511_s30 = sshll.u32 %s345_s29, 4  ;;  %s1514_s9 = sshll.u32 %s345_s29, 5 }
   0xe   : > { %s348_s12 = scalar_lea.vmem %s2035_s2, %s1511_s30  ;;  %s1809_s15 = scalar_lea.vmem %s2036_s3, %s1511_s30 }
   0xf   : > { %s1814_s18 = scalar_lea.vmem %s2037_s4, %s1511_s30  ;;  %s1819_s21 = scalar_lea.vmem %s2038_s5, %s1514_s9 }
  0x10   : > { %s1484_s22 = sshll.u32 %s345_s29, 3  ;;  %372 = sbr.rel (%p1485_p4) target bundleno = 23 (0x17), region = 56 }
  0x11   : > { %s367_s25 = scalar_lea.vmem %s2039_s6, %s1484_s22 }
  0x15   : > { %v373_v0 = vld [vmem:[%s2033_s0] sm:$0xff]  ;;  %vm375_vm0 = vcmask 261120   ;;  %v374_v1 = vld [vmem:[%s2033_s0 + $0x8] sm:$0xff] }
  0x16   : > { %376 = vst.msk [vmem:[#allocation2] sm:$0xff] %vm375_vm0, %v373_v0  ;;  %377 = vst.msk [vmem:[#allocation2 + $0x8] sm:$0xff] %vm375_vm0, %v374_v1 }
  0x17 PF: > { %v1663_v2 = vld [vmem:[%s348_s12 + $0x8] sm:$0xff]   ;;  %v1735_v3 = vmov 0.0   ;;  %v1664_v4 = vld [vmem:[%s348_s12] sm:$0xff]   ;;  %vm1736_vm1 = vmmov 0   ;;  %vm402_vm2 = vcmask 261120   ;;  %v386_v8 = vlaneseq  ;;  %s1737_s29 = smov 104  }
  0x18   : > { %1545 = vmatprep.subr.bf16.mxu0 %v1735_v3  ;;  %1553 = vmatprep.subr.bf16.mxu1 %v1735_v3  ;;  %v1851_v11 = vld [vmem:[%s367_s25] sm:$0xff]  ;;  %s1738_s9 = smov 120   ;;  %s1739_s12 = smov 96   ;;  %vm459_vm3 = vcmask 64512   ;;  %vm654_vm4 = vcmask 130048   ;;  %v456_v35 = vld [vmem:[%s2034_s1 + $0x8] sm:$0xff] }
  0x19   : > { %1546 = vmatpush3.bf16.msra.mxu0 %v1663_v2  ;;  %1549 = vmatprep.mubr.msk.bf16.mxu0 %vm1736_vm1, %v1735_v3  ;;  %v1848_v9 = vshrl.u32 %v386_v8, 7  ;;  %s1740_s13 = smov 112   ;;  %v455_v31 = vld [vmem:[%s2034_s1] sm:$0xff]  ;;  %s1741_s20 = smov 64   ;;  %vm963_vm5 = vcmask 195584   ;;  %vm1176_vm6 = vcmask 523264  }
  0x1a   : > { %1547 = vmatprep.subr.bf16.mxu0 %v1735_v3  ;;  %1555 = vmatprep.mubr.msk.bf16.mxu1 %vm1736_vm1, %v1735_v3  ;;  %s1742_s22 = smov 8   ;;  %s1743_s23 = smov 16  }
  0x1b   : > { %v388_v10 = vsub.s32 0, %v1848_v9  ;;  %p1508_p5 = scmp.ne.s32.totalorder %s1797_s28, 1 }
  0x1d   : > { %v1835_v5 = vld [vmem:[#allocation2] sm:$0xff]  ;;  %v1837_v6 = vld [vmem:[#allocation2 + $0x8] sm:$0xff]  ;;  %1548 = vmatpush3.bf16.msra.mxu0 %v1664_v4  ;;  %v389_v13 = vrot.slane %v1851_v11, %v388_v10 }
  0x1e   : > { %v381_v7 = vpack.c.bf16 %v1837_v6, %v1835_v5  ;;  %1559 = vmatprep.subr.bf16.mxu0 %v1735_v3 }
  0x20   : > { %1550 = vmatmul.mubr.msk.bf16.vlgmr.msra.gmra.mxu0 %vm402_vm2, %v381_v7 }
  0x21   : > { %1561 = vmatprep.mubr.msk.bf16.mxu0 %vm1736_vm1, %v1735_v3 }
  0xe0   : > { %v440_v12 = vpop.f32.mrf.mxu0 }
  0xe1   : > { %v441_v16 = vadd.f32 %v440_v12, %v389_v13 }
  0xe2   : > { %v1551_v14 = vpop.f32.mrf.mxu0 }
  0xe4   : > { %v443_v15 = vpop.f32.mrf.mxu0 }
  0xe5   : > { %v444_v17 = vadd.f32 %v443_v15, %v389_v13 }
  0xe6   : > { %v1552_v18 = vpop.f32.mrf.mxu0 }
  0xe7   : > { %v1856_v19 = vpack.c.bf16 %v444_v17, %v441_v16 }
  0xe9   : > { %453 = vrot.lane.b32.xlu1 %v1856_v19, %s1737_s29  ;;  %449 = vrot.lane.b32.xlu0 %v1856_v19, %s1738_s9 }
  0xed   : > { %457 = vrot.lane.b32.xlu1 %v1856_v19, %s1739_s12  ;;  %451 = vrot.lane.b32.xlu0 %v1856_v19, %s1740_s13 }
 0x15b   : > { %v1862_v20 = vpop.permute.xlu1 %453  ;;  %v1864_v21 = vpop.permute.xlu0 %449 }
 0x15c   : > { %507 = vrot.lane.b32.xlu0 %v1864_v21, %s1739_s12 }
 0x15f   : > { %v458_v22 = vpop.permute.xlu1 %457  ;;  %v1867_v23 = vpop.permute.xlu0 %451 }
 0x160   : > { %605 = vrot.lane.b32.xlu0 %v1862_v20, %s1739_s12  ;;  %556 = vrot.lane.b32.xlu1 %v1867_v23, %s1739_s12  ;;  %v464_v24 = vsel %vm459_vm3, %v458_v22, 0 }
 0x161   : > { %1554 = vmatpush3.bf16.xpose.msra.mxu1 %v464_v24 }
 0x162   : > { %1565 = vmatprep.subr.bf16.mxu1 %v1735_v3 }
 0x168   : > { %1556 = vmatmul.mubr.msk.bf16.vlgmr.msra.gmra.mxu1 %vm459_vm3, %v1856_v19 }
 0x169   : > { %1567 = vmatprep.mubr.msk.bf16.mxu1 %vm1736_vm1, %v1735_v3 }
 0x1ce   : > { %v508_v25 = vpop.permute.xlu0 %507 }
 0x1cf   : > { %v513_v26 = vsel %vm459_vm3, %v508_v25, 0 }
 0x1d0   : > { %1560 = vmatpush3.bf16.xpose.msra.mxu0 %v513_v26 }
 0x1d1   : > { %1571 = vmatprep.subr.bf16.mxu0 %v1735_v3 }
 0x1d2   : > { %v557_v27 = vpop.permute.xlu1 %556  ;;  %v606_v29 = vpop.permute.xlu0 %605 }
 0x1d3   : > { %v562_v28 = vsel %vm459_vm3, %v557_v27, 0  ;;  %v611_v30 = vsel %vm459_vm3, %v606_v29, 0 }
 0x1d4   : > { %1566 = vmatpush3.bf16.xpose.msra.mxu1 %v562_v28 }
 0x1d5   : > { %1577 = vmatprep.subr.bf16.mxu1 %v1735_v3 }
 0x1d7   : > { %1562 = vmatmul.mubr.msk.bf16.vlgmr.msra.gmra.mxu0 %vm459_vm3, %v1864_v21 }
 0x1d8   : > { %1572 = vmatpush3.bf16.xpose.msra.mxu0 %v611_v30  ;;  %1573 = vmatprep.mubr.msk.bf16.mxu0 %vm1736_vm1, %v1735_v3 }
 0x1d9   : > { %1583 = vmatprep.subr.bf16.mxu0 %v1735_v3 }
 0x1db   : > { %1568 = vmatmul.mubr.msk.bf16.vlgmr.msra.gmra.mxu1 %vm459_vm3, %v1867_v23 }
 0x1dc   : > { %1579 = vmatprep.mubr.msk.bf16.mxu1 %vm1736_vm1, %v1735_v3 }
 0x1df   : > { %1574 = vmatmul.mubr.msk.bf16.vlgmr.msra.gmra.mxu0 %vm459_vm3, %v1862_v20 }
 0x1e0   : > { %1585 = vmatprep.mubr.msk.bf16.mxu0 %vm1736_vm1, %v1735_v3 }
 0x228   : > { %v500_v32 = vpop.f32.mrf.mxu1 }
 0x229   : > { %v501_v33 = vadd.f32 %v500_v32, %v455_v31 }
 0x22a   : > { %v1557_v34 = vpop.f32.mrf.mxu1 }
 0x22b   : > { %v655_v36 = vsel %vm654_vm4, %v501_v33, -inf }
 0x22c   : > { %v503_v37 = vpop.f32.mrf.mxu1  ;;  %656 = vmax.xlane.f32.xlu1 %v655_v36 }
 0x22d   : > { %v504_v38 = vadd.f32 %v503_v37, %v456_v35 }
 0x22e   : > { %v1558_v39 = vpop.f32.mrf.mxu1 }
 0x22f   : > { %v658_v40 = vsel %vm654_vm4, %v504_v38, -inf }
 0x230   : > { %659 = vmax.xlane.f32.xlu0 %v658_v40 }
 0x297   : > { %v549_v41 = vpop.f32.mrf.mxu0 }
 0x298   : > { %v550_v42 = vadd.f32 %v549_v41, %v455_v31 }
 0x299   : > { %v1563_v43 = vpop.f32.mrf.mxu0 }
 0x29a   : > { %v661_v44 = vsel %vm654_vm4, %v550_v42, -inf }
 0x29b   : > { %v598_v45 = vpop.f32.mrf.mxu1  ;;  %662 = vmax.xlane.f32.xlu0 %v661_v44  ;;  %v552_v46 = vpop.f32.mrf.mxu0 }
 0x29c   : > { %v599_v47 = vadd.f32 %v598_v45, %v455_v31  ;;  %v553_v48 = vadd.f32 %v552_v46, %v456_v35 }
 0x29d   : > { %v1564_v49 = vpop.f32.mrf.mxu0  ;;  %v1569_v50 = vpop.f32.mrf.mxu1 }
 0x29e   : > { %v667_v51 = vsel %vm654_vm4, %v599_v47, -inf  ;;  %v664_v52 = vsel %vm654_vm4, %v553_v48, -inf }
 0x29f   : > { %v601_v53 = vpop.f32.mrf.mxu1  ;;  %668 = vmax.xlane.f32.xlu0 %v667_v51  ;;  %665 = vmax.xlane.f32.xlu1 %v664_v52  ;;  %v647_v54 = vpop.f32.mrf.mxu0 }
 0x2a0   : > { %v602_v55 = vadd.f32 %v601_v53, %v456_v35  ;;  %v648_v56 = vadd.f32 %v647_v54, %v455_v31 }
 0x2a1   : > { %v1570_v57 = vpop.f32.mrf.mxu1  ;;  %v1575_v58 = vpop.f32.mrf.mxu0 }
 0x2a2   : > { %v670_v59 = vsel %vm654_vm4, %v602_v55, -inf  ;;  %v673_v60 = vsel %vm654_vm4, %v648_v56, -inf }
 0x2a3   : > { %671 = vmax.xlane.f32.xlu1 %v670_v59  ;;  %674 = vmax.xlane.f32.xlu0 %v673_v60  ;;  %v650_v61 = vpop.f32.mrf.mxu0 }
 0x2a4   : > { %v651_v62 = vadd.f32 %v650_v61, %v456_v35 }
 0x2a5   : > { %v1576_v63 = vpop.f32.mrf.mxu0 }
 0x2a6   : > { %v676_v0 = vsel %vm654_vm4, %v651_v62, -inf }
 0x2a7   : > { %677 = vmax.xlane.f32.xlu1 %v676_v0 }
 0x2b5   : > { %v657_v1 = vpop.xlane.xlu1 %656 }
 0x2b6   : > { %v679_v2 = vsub.f32 %v501_v33, %v657_v1 }
 0x2b8   : > { %794 = vrot.lane.b32.xlu1 %v1864_v21, %s1741_s20  ;;  %v687_v7 = vmul.f32 1.442695, %v679_v2 }
 0x2b9   : > { %747 = vrot.lane.b32.xlu0 %v1856_v19, %s1741_s20  ;;  %v660_v4 = vpop.xlane.xlu0 %659 }
 0x2ba   : > { %v680_v8 = vsub.f32 %v504_v38, %v660_v4  ;;  %1673 = vpow2.f32 %v687_v7 }
 0x2bc   : > { %v689_v12 = vmul.f32 1.442695, %v680_v8 }
 0x2be   : > { %1675 = vpow2.f32 %v689_v12 }
 0x2c7   : > { %v1674_v13 = vpop.eup %1673 }
 0x2c8   : > { %v703_v14 = vsel %vm654_vm4, %v1674_v13, 0.0 }
 0x2cb   : > { %v1676_v15 = vpop.eup %1675 }
 0x2cc   : > { %v706_v16 = vsel %vm654_vm4, %v1676_v15, 0.0 }
 0x2d8   : > { %704 = vadd.xlane.f32.xlu0 %v703_v14 }
 0x2dc   : > { %707 = vadd.xlane.f32.xlu1 %v706_v16 }
 0x324   : > { %v663_v17 = vpop.xlane.xlu0 %662 }
 0x325   : > { %v681_v18 = vsub.f32 %v550_v42, %v663_v17 }
 0x327   : > { %v691_v21 = vmul.f32 1.442695, %v681_v18 }
 0x328   : > { %v669_v19 = vpop.xlane.xlu0 %668  ;;  %v666_v22 = vpop.xlane.xlu1 %665 }
 0x329   : > { %1677 = vpow2.f32 %v691_v21  ;;  %v683_v24 = vsub.f32 %v599_v47, %v669_v19  ;;  %v682_v25 = vsub.f32 %v553_v48, %v666_v22 }
 0x32b   : > { %v695_v26 = vmul.f32 1.442695, %v683_v24  ;;  %v693_v27 = vmul.f32 1.442695, %v682_v25 }
 0x32c   : > { %v672_v28 = vpop.xlane.xlu1 %671  ;;  %v675_v29 = vpop.xlane.xlu0 %674 }
 0x32d   : > { %1679 = vpow2.f32 %v695_v26  ;;  %v684_v30 = vsub.f32 %v602_v55, %v672_v28  ;;  %v685_v31 = vsub.f32 %v648_v56, %v675_v29 }
 0x32e   : > { %1681 = vpow2.f32 %v693_v27  ;;  %v1665_v27 = vld [vmem:[%s1809_s15 + $0x8] sm:$0xff]  }
 0x32f   : > { %v697_v32 = vmul.f32 1.442695, %v684_v30  ;;  %v699_v33 = vmul.f32 1.442695, %v685_v31  ;;  %v1666_v30 = vld [vmem:[%s1809_s15] sm:$0xff]   ;;  %s1744_s15 = smov 24  }
 0x330   : > { %v748_v34 = vpop.permute.xlu0 %747  ;;  %v678_v35 = vpop.xlane.xlu1 %677 }
 0x331   : > { %1683 = vpow2.f32 %v697_v32  ;;  %v686_v36 = vsub.f32 %v651_v62, %v678_v35  ;;  %1578 = vmatpush3.bf16.msra.mxu1 %v748_v34 }
 0x332   : > { %1685 = vpow2.f32 %v699_v33  ;;  %1589 = vmatprep.subr.bf16.mxu1 %v1735_v3 }
 0x333   : > { %v701_v37 = vmul.f32 1.442695, %v686_v36 }
 0x334   : > { %v795_v38 = vpop.permute.xlu1 %794 }
 0x335   : > { %1687 = vpow2.f32 %v701_v37  ;;  %1584 = vmatpush3.bf16.msra.mxu0 %v795_v38 }
 0x336   : > { %v1678_v39 = vpop.eup %1677  ;;  %1595 = vmatprep.subr.bf16.mxu0 %v1735_v3 }
 0x337   : > { %v709_v40 = vsel %vm654_vm4, %v1678_v39, 0.0 }
 0x338   : > { %710 = vadd.xlane.f32.xlu0 %v709_v40 }
 0x33a   : > { %v1680_v41 = vpop.eup %1679 }
 0x33b   : > { %v1682_v42 = vpop.eup %1681  ;;  %v715_v43 = vsel %vm654_vm4, %v1680_v41, 0.0 }
 0x33c   : > { %716 = vadd.xlane.f32.xlu0 %v715_v43  ;;  %v712_v44 = vsel %vm654_vm4, %v1682_v42, 0.0 }
 0x33d   : > { %713 = vadd.xlane.f32.xlu1 %v712_v44 }
 0x33e   : > { %v1684_v45 = vpop.eup %1683 }
 0x33f   : > { %v1686_v46 = vpop.eup %1685  ;;  %v718_v47 = vsel %vm654_vm4, %v1684_v45, 0.0 }
 0x340   : > { %v721_v48 = vsel %vm654_vm4, %v1686_v46, 0.0 }
 0x341   : > { %722 = vadd.xlane.f32.xlu0 %v721_v48  ;;  %719 = vadd.xlane.f32.xlu1 %v718_v47 }
 0x342   : > { %v1688_v49 = vpop.eup %1687 }
 0x343   : > { %v724_v50 = vsel %vm654_vm4, %v1688_v49, 0.0 }
 0x345   : > { %725 = vadd.xlane.f32.xlu1 %v724_v50 }
 0x356   : > { %841 = vrot.lane.b32.xlu1 %v1867_v23, %s1741_s20 }
 0x357   : > { %888 = vrot.lane.b32.xlu0 %v1862_v20, %s1741_s20 }
 0x361   : > { %v705_v51 = vpop.xlane.xlu0 %704 }
 0x362   : > { %1689 = vrcp.f32 %v705_v51 }
 0x365   : > { %v708_v52 = vpop.xlane.xlu1 %707 }
 0x366   : > { %1691 = vrcp.f32 %v708_v52 }
 0x36f   : > { %v1690_v53 = vpop.eup %1689 }
 0x370   : > { %v735_v55 = vmul.f32 %v1690_v53, %v1674_v13 }
 0x373   : > { %v1692_v54 = vpop.eup %1691 }
 0x374   : > { %v736_v56 = vmul.f32 %v1692_v54, %v1676_v15 }
 0x376   : > { %v743_v57 = vpack.c.bf16 %v736_v56, %v735_v55 }
 0x378   : > { %1580 = vmatmul.mubr.msk.bf16.vlgmr.msra.gmra.mxu1 %vm654_vm4, %v743_v57 }
 0x379   : > { %1591 = vmatprep.mubr.msk.bf16.mxu1 %vm1736_vm1, %v1735_v3 }
 0x3c1   : > { %v711_v58 = vpop.xlane.xlu0 %710 }
 0x3c2   : > { %1693 = vrcp.f32 %v711_v58 }
 0x3c5   : > { %v717_v23 = vpop.xlane.xlu0 %716 }
 0x3c6   : > { %v714_v59 = vpop.xlane.xlu1 %713 }
 0x3c7   : > { %1695 = vrcp.f32 %v714_v59  ;;  %v973_v59 = vsub.s32 1, %v1848_v9 }
 0x3c8   : > { %1697 = vrcp.f32 %v717_v23 }
 0x3ca   : > { %v723_v20 = vpop.xlane.xlu0 %722  ;;  %v720_v60 = vpop.xlane.xlu1 %719 }
 0x3cb   : > { %1699 = vrcp.f32 %v720_v60 }
 0x3cc   : > { %1701 = vrcp.f32 %v723_v20  ;;  %v974_v20 = vrot.slane %v1851_v11, %v973_v59 }
 0x3ce   : > { %v726_v61 = vpop.xlane.xlu1 %725  ;;  %v889_v12 = vpop.permute.xlu0 %888 }
 0x3cf   : > { %1703 = vrcp.f32 %v726_v61  ;;  %v1694_v62 = vpop.eup %1693 }
 0x3d0   : > { %v737_v1 = vmul.f32 %v1694_v62, %v1678_v39 }
 0x3d2   : > { %v842_v63 = vpop.permute.xlu1 %841 }
 0x3d3   : > { %1590 = vmatpush3.bf16.msra.mxu1 %v842_v63 }
 0x3d4   : > { %v1696_v0 = vpop.eup %1695  ;;  %1601 = vmatprep.subr.bf16.mxu1 %v1735_v3 }
 0x3d5   : > { %v738_v2 = vmul.f32 %v1696_v0, %v1682_v42  ;;  %v1698_v4 = vpop.eup %1697 }
 0x3d6   : > { %v739_v14 = vmul.f32 %v1698_v4, %v1680_v41 }
 0x3d7   : > { %v744_v7 = vpack.c.bf16 %v738_v2, %v737_v1 }
 0x3d8   : > { %v1700_v8 = vpop.eup %1699 }
 0x3d9   : > { %1586 = vmatmul.mubr.msk.bf16.vlgmr.msra.gmra.mxu0 %vm654_vm4, %v744_v7  ;;  %v1702_v13 = vpop.eup %1701  ;;  %v740_v15 = vmul.f32 %v1700_v8, %v1684_v45 }
 0x3da   : > { %1596 = vmatpush3.bf16.msra.mxu0 %v889_v12  ;;  %1597 = vmatprep.mubr.msk.bf16.mxu0 %vm1736_vm1, %v1735_v3  ;;  %v741_v18 = vmul.f32 %v1702_v13, %v1686_v46 }
 0x3db   : > { %1609 = vmatprep.subr.bf16.mxu0 %v1735_v3  ;;  %v745_v17 = vpack.c.bf16 %v740_v15, %v739_v14 }
 0x3dc   : > { %v1704_v16 = vpop.eup %1703 }
 0x3dd   : > { %v742_v21 = vmul.f32 %v1704_v16, %v1688_v49  ;;  %1592 = vmatmul.mubr.msk.bf16.vlgmr.msra.gmra.mxu1 %vm654_vm4, %v745_v17 }
 0x3de   : > { %1605 = vmatprep.mubr.msk.bf16.mxu1 %vm1736_vm1, %v1735_v3  ;;  %1602 = vmatpush3.bf16.msra.mxu1 %v1665_v27 }
 0x3df   : > { %v746_v19 = vpack.c.bf16 %v742_v21, %v741_v18  ;;  %1603 = vmatprep.subr.bf16.mxu1 %v1735_v3 }
 0x3e1   : > { %1598 = vmatmul.mubr.msk.bf16.vlgmr.msra.gmra.mxu0 %vm654_vm4, %v746_v19 }
 0x3e2   : > { %1613 = vmatprep.mubr.msk.bf16.mxu0 %vm1736_vm1, %v1735_v3  ;;  %1604 = vmatpush3.bf16.msra.mxu1 %v1666_v30 }
 0x3e3   : > { %1617 = vmatprep.subr.bf16.mxu1 %v1735_v3 }
 0x438   : > { %v787_v22 = vpop.f32.mrf.mxu1 }
 0x43a   : > { %v1581_v24 = vpop.f32.mrf.mxu1 }
 0x43b   : > { %v1669_v24 = vld [vmem:[%s1819_s21 + $0x18] sm:$0xff]  }
 0x43c   : > { %v790_v25 = vpop.f32.mrf.mxu1 }
 0x43e   : > { %v1582_v26 = vpop.f32.mrf.mxu1 }
 0x499   : > { %v834_v28 = vpop.f32.mrf.mxu0 }
 0x49b   : > { %v1587_v29 = vpop.f32.mrf.mxu0 }
 0x49d   : > { %v837_v31 = vpop.f32.mrf.mxu0  ;;  %v881_v33 = vpop.f32.mrf.mxu1 }
 0x49e   : > { %v1648_v32 = vpack.i.bf16 %v837_v31, %v834_v28  ;;  %v1062_v31 = vsub.s32 2, %v1848_v9 }
 0x49f   : > { %v1588_v34 = vpop.f32.mrf.mxu0  ;;  %v1593_v35 = vpop.f32.mrf.mxu1 }
 0x4a0   : > { %1649 = vrot.lane.b32.xlu1 %v1648_v32, %s1742_s22  ;;  %v1063_v34 = vrot.slane %v1851_v11, %v1062_v31  ;;  %v1068_v35 = vsub.s32 3, %v1848_v9 }
 0x4a1   : > { %v928_v36 = vpop.f32.mrf.mxu0  ;;  %v884_v37 = vpop.f32.mrf.mxu1 }
 0x4a2   : > { %v1653_v38 = vpack.i.bf16 %v884_v37, %v881_v33 }
 0x4a3   : > { %v1599_v39 = vpop.f32.mrf.mxu0  ;;  %v1594_v40 = vpop.f32.mrf.mxu1 }
 0x4a4   : > { %1654 = vrot.lane.b32.xlu0 %v1653_v38, %s1743_s23  ;;  %v1069_v39 = vrot.slane %v1851_v11, %v1068_v35 }
 0x4a5   : > { %v931_v41 = vpop.f32.mrf.mxu0 }
 0x4a6   : > { %v1658_v42 = vpack.i.bf16 %v931_v41, %v928_v36 }
 0x4a7   : > { %v1600_v43 = vpop.f32.mrf.mxu0 }
 0x4a8   : > { %1659 = vrot.lane.b32.xlu1 %v1658_v42, %s1744_s15 }
 0x512   : > { %v1650_v44 = vpop.permute.xlu1 %1649 }
 0x513   : > { %v1652_v45 = vunpack.i.h.bf16 %v1650_v44  ;;  %v1651_v46 = vunpack.i.l.bf16 %v1650_v44  ;;  %v1670_v44 = vld [vmem:[%s1819_s21 + $0x10] sm:$0xff]  }
 0x515   : > { %v960_v51 = vsel %vm459_vm3, %v790_v25, %v1652_v45  ;;  %v959_v52 = vsel %vm459_vm3, %v787_v22, %v1651_v46  ;;  %v1668_v22 = vld [vmem:[%s1814_s18] sm:$0xff]   ;;  %v1671_v45 = vld [vmem:[%s1819_s21 + $0x8] sm:$0xff]  }
 0x516   : > { %v1655_v47 = vpop.permute.xlu0 %1654  ;;  %v1672_v46 = vld [vmem:[%s1819_s21] sm:$0xff]  }
 0x517   : > { %v1657_v48 = vunpack.i.h.bf16 %v1655_v47  ;;  %v1656_v49 = vunpack.i.l.bf16 %v1655_v47  ;;  %v1079_v47 = vsub.s32 4, %v1848_v9 }
 0x519   : > { %v961_v55 = vsel %vm654_vm4, %v959_v52, %v1656_v49  ;;  %v962_v56 = vsel %vm654_vm4, %v960_v51, %v1657_v48  ;;  %v1080_v48 = vrot.slane %v1851_v11, %v1079_v47 }
 0x51a   : > { %v1660_v50 = vpop.permute.xlu1 %1659 }
 0x51b   : > { %v1662_v53 = vunpack.i.h.bf16 %v1660_v50  ;;  %v1661_v54 = vunpack.i.l.bf16 %v1660_v50 }
 0x51d   : > { %v965_v57 = vsel %vm963_vm5, %v962_v56, %v1662_v53  ;;  %v964_v58 = vsel %vm963_vm5, %v961_v55, %v1661_v54 }
 0x51e   : > { %v966_v23 = vpack.c.bf16 %v965_v57, %v964_v58  ;;  %v1150_v58 = vsub.s32 5, %v1848_v9 }
 0x520   : > { %1606 = vmatmul.mubr.msk.bf16.vlgmr.msra.gmra.mxu1 %vm402_vm2, %v966_v23 }
 0x521   : > { %1625 = vmatprep.mubr.msk.bf16.mxu1 %vm1736_vm1, %v1735_v3  ;;  %1618 = vmatpush3.bf16.msra.mxu1 %v1669_v24 }
 0x522   : > { %1619 = vmatprep.subr.bf16.mxu1 %v1735_v3 }
 0x525   : > { %1620 = vmatpush3.bf16.msra.mxu1 %v1670_v44 }
 0x526   : > { %1621 = vmatprep.subr.bf16.mxu1 %v1735_v3 }
 0x529   : > { %1622 = vmatpush3.bf16.msra.mxu1 %v1671_v45 }
 0x52a   : > { %1623 = vmatprep.subr.bf16.mxu1 %v1735_v3 }
 0x52d   : > { %1624 = vmatpush3.bf16.msra.mxu1 %v1672_v46 }
 0x5e0   : > { %v1024_v60 = vpop.f32.mrf.mxu1 }
 0x5e1   : > { %v1025_v61 = vadd.f32 %v1024_v60, %v974_v20 }
 0x5e2   : > { %v1607_v62 = vpop.f32.mrf.mxu1 }
 0x5e3   : > { %v1031_v63 = vadd.f32 %v1025_v61, %v1835_v5 }
 0x5e4   : > { %v1027_v0 = vpop.f32.mrf.mxu1 }
 0x5e5   : > { %v1028_v1 = vadd.f32 %v1027_v0, %v974_v20  ;;  %v1033_v2 = vsel %vm402_vm2, %v1031_v63, 0.0 }
 0x5e6   : > { %1034 = vadd.xlane.f32.xlu0 %v1033_v2  ;;  %v1608_v4 = vpop.f32.mrf.mxu1 }
 0x5e7   : > { %v1032_v7 = vadd.f32 %v1028_v1, %v1837_v6  ;;  %v1667_v6 = vld [vmem:[%s1814_s18 + $0x8] sm:$0xff]  }
 0x5e8   : > { %1610 = vmatpush3.bf16.msra.mxu0 %v1667_v6 }
 0x5e9   : > { %v1036_v8 = vsel %vm402_vm2, %v1032_v7, 0.0  ;;  %1611 = vmatprep.subr.bf16.mxu0 %v1735_v3  ;;  %v1151_v3 = vrot.slane %v1851_v11, %v1150_v58 }
 0x5ea   : > { %1037 = vadd.xlane.f32.xlu1 %v1036_v8 }
 0x5ec   : > { %1612 = vmatpush3.bf16.msra.mxu0 %v1668_v22 }
 0x66f   : > { %v1035_v12 = vpop.xlane.xlu0 %1034 }
 0x670   : > { %v1040_v13 = vmul.f32 0.03125, %v1035_v12 }
 0x672   : > { %v1042_v14 = vsub.f32 %v1031_v63, %v1040_v13 }
 0x673   : > { %v1038_v15 = vpop.xlane.xlu1 %1037 }
 0x674   : > { %v1041_v16 = vmul.f32 0.03125, %v1038_v15  ;;  %v1044_v5 = vmul.f32 %v1042_v14, %v1042_v14 }
 0x676   : > { %v1043_v17 = vsub.f32 %v1032_v7, %v1041_v16  ;;  %v1046_v18 = vsel %vm402_vm2, %v1044_v5, 0.0 }
 0x677   : > { %1047 = vadd.xlane.f32.xlu0 %v1046_v18 }
 0x678   : > { %v1045_v21 = vmul.f32 %v1043_v17, %v1043_v17 }
 0x67a   : > { %v1049_v19 = vsel %vm402_vm2, %v1045_v21, 0.0 }
 0x67b   : > { %1050 = vadd.xlane.f32.xlu0 %v1049_v19 }
 0x700   : > { %v1048_v25 = vpop.xlane.xlu0 %1047 }
 0x701   : > { %v1052_v26 = vmul.f32 0.03125, %v1048_v25 }
 0x703   : > { %v1054_v27 = vadd.f32 1e-05, %v1052_v26  ;;  %v1251_v26 = vsub.s32 6, %v1848_v9 }
 0x704   : > { %v1051_v28 = vpop.xlane.xlu0 %1050 }
 0x705   : > { %1705 = vrsqrt.f32 %v1054_v27  ;;  %v1053_v29 = vmul.f32 0.03125, %v1051_v28  ;;  %v1257_v27 = vsub.s32 7, %v1848_v9  ;;  %v1252_v28 = vrot.slane %v1851_v11, %v1251_v26 }
 0x707   : > { %v1055_v30 = vadd.f32 1e-05, %v1053_v29 }
 0x709   : > { %1707 = vrsqrt.f32 %v1055_v30  ;;  %v1258_v30 = vrot.slane %v1851_v11, %v1257_v27 }
 0x712   : > { %v1706_v32 = vpop.eup %1705 }
 0x713   : > { %v1058_v33 = vmul.f32 %v1706_v32, %v1042_v14 }
 0x715   : > { %v1064_v38 = vmul.f32 %v1063_v34, %v1058_v33 }
 0x716   : > { %v1708_v36 = vpop.eup %1707 }
 0x717   : > { %v1059_v37 = vmul.f32 %v1708_v36, %v1043_v17  ;;  %v1070_v41 = vadd.f32 %v1069_v39, %v1064_v38 }
 0x719   : > { %v1065_v40 = vmul.f32 %v1063_v34, %v1059_v37 }
 0x71b   : > { %v1071_v42 = vadd.f32 %v1069_v39, %v1065_v40 }
 0x71d   : > { %v1072_v43 = vpack.c.bf16 %v1071_v42, %v1070_v41 }
 0x71f   : > { %1614 = vmatmul.mubr.msk.bf16.vlgmr.msra.gmra.mxu0 %vm402_vm2, %v1072_v43 }
 0x7df   : > { %v1130_v49 = vpop.f32.mrf.mxu0 }
 0x7e0   : > { %v1131_v51 = vadd.f32 %v1130_v49, %v1080_v48 }
 0x7e1   : > { %v1615_v50 = vpop.f32.mrf.mxu0 }
 0x7e2   : > { %v1137_v55 = vmax.f32 %v1131_v51, 0.0 }
 0x7e3   : > { %v1133_v52 = vpop.f32.mrf.mxu0 }
 0x7e4   : > { %v1134_v53 = vadd.f32 %v1133_v52, %v1080_v48 }
 0x7e5   : > { %v1616_v54 = vpop.f32.mrf.mxu0 }
 0x7e6   : > { %v1138_v56 = vmax.f32 %v1134_v53, 0.0 }
 0x7e8   : > { %v1139_v57 = vpack.c.bf16 %v1138_v56, %v1137_v55 }
 0x7ea   : > { %1626 = vmatmul.mubr.msk.bf16.vlgmr.msra.gmra.mxu1 %vm1176_vm6, %v1139_v57 }
 0x8aa   : > { %v1214_v23 = vpop.f32.mrf.mxu1 }
 0x8ab   : > { %v1215_v20 = vadd.f32 %v1214_v23, %v1151_v3 }
 0x8ac   : > { %v1627_v60 = vpop.f32.mrf.mxu1 }
 0x8ad   : > { %v1221_v61 = vadd.f32 %v1215_v20, %v1070_v41 }
 0x8ae   : > { %v1217_v62 = vpop.f32.mrf.mxu1 }
 0x8af   : > { %v1218_v63 = vadd.f32 %v1217_v62, %v1151_v3  ;;  %v1223_v0 = vsel %vm402_vm2, %v1221_v61, 0.0 }
 0x8b0   : > { %1224 = vadd.xlane.f32.xlu1 %v1223_v0  ;;  %v1628_v1 = vpop.f32.mrf.mxu1 }
 0x8b1   : > { %v1222_v2 = vadd.f32 %v1218_v63, %v1071_v42 }
 0x8b3   : > { %v1226_v4 = vsel %vm402_vm2, %v1222_v2, 0.0 }
 0x8b4   : > { %1227 = vadd.xlane.f32.xlu0 %v1226_v4 }
 0x939   : > { %v1225_v7 = vpop.xlane.xlu1 %1224 }
 0x93a   : > { %v1229_v8 = vmul.f32 0.03125, %v1225_v7 }
 0x93c   : > { %v1231_v12 = vsub.f32 %v1221_v61, %v1229_v8 }
 0x93d   : > { %v1228_v13 = vpop.xlane.xlu0 %1227 }
 0x93e   : > { %v1230_v14 = vmul.f32 0.03125, %v1228_v13  ;;  %v1233_v15 = vmul.f32 %v1231_v12, %v1231_v12 }
 0x940   : > { %v1232_v16 = vsub.f32 %v1222_v2, %v1230_v14  ;;  %v1235_v5 = vsel %vm402_vm2, %v1233_v15, 0.0 }
 0x941   : > { %1236 = vadd.xlane.f32.xlu1 %v1235_v5 }
 0x942   : > { %v1234_v17 = vmul.f32 %v1232_v16, %v1232_v16 }
 0x944   : > { %v1238_v18 = vsel %vm402_vm2, %v1234_v17, 0.0 }
 0x945   : > { %1239 = vadd.xlane.f32.xlu0 %v1238_v18 }
 0x9ca   : > { %v1237_v21 = vpop.xlane.xlu1 %1236 }
 0x9cb   : > { %v1241_v19 = vmul.f32 0.03125, %v1237_v21 }
 0x9cd   : > { %v1243_v6 = vadd.f32 1e-05, %v1241_v19 }
 0x9ce   : > { %v1240_v22 = vpop.xlane.xlu0 %1239 }
 0x9cf   : > { %1709 = vrsqrt.f32 %v1243_v6  ;;  %v1242_v24 = vmul.f32 0.03125, %v1240_v22 }
 0x9d1   : > { %v1244_v25 = vadd.f32 1e-05, %v1242_v24 }
 0x9d3   : > { %1711 = vrsqrt.f32 %v1244_v25 }
 0x9dc   : > { %v1710_v29 = vpop.eup %1709 }
 0x9dd   : > { %v1247_v32 = vmul.f32 %v1710_v29, %v1231_v12 }
 0x9df   : > { %v1253_v33 = vmul.f32 %v1252_v28, %v1247_v32 }
 0x9e0   : > { %v1712_v34 = vpop.eup %1711 }
 0x9e1   : > { %v1259_v36 = vadd.f32 %v1258_v30, %v1253_v33  ;;  %v1248_v37 = vmul.f32 %v1712_v34, %v1232_v16 }
 0x9e3   : > { %1261 = vst.msk [vmem:[#allocation2] sm:$0xff] %vm402_vm2, %v1259_v36  ;;  %v1254_v38 = vmul.f32 %v1252_v28, %v1248_v37  ;;  %1266 = sbr.rel (%p1508_p5) target bundleno = 3192 (0xc78), region = 60 }
 0x9e5   : > { %v1260_v39 = vadd.f32 %v1258_v30, %v1254_v38 }
 0x9e7   : > { %1262 = vst.msk [vmem:[#allocation2 + $0x8] sm:$0xff] %vm402_vm2, %v1260_v39 }
 0x9e8   : > { %v1268_v40 = vsel %vm402_vm2, %v1259_v36, 0.0  ;;  %v1271_v41 = vsel %vm402_vm2, %v1260_v39, 0.0  ;;  %v1267_v57 = vld [vmem:[%s2040_s7] sm:$0xf]  ;;  %v1745_v8 = vmov 0   ;;  %vm1324_vm7 = vcmask 7168  }
 0x9e9   : > { %1269 = vadd.xlane.f32.xlu0 %v1268_v40  ;;  %v1297_v58 = vrot.slane %v1267_v57, %v388_v10  ;;  %v1303_v20 = vrot.slane %v1267_v57, %v973_v59  ;;  %v1309_v61 = vrot.slane %v1267_v57, %v1062_v31  ;;  %1714 = vset.pattern.permute.xlu1 %v1745_v8  ;;  %vm1391_vm8 = vcmask 1041409  }
 0x9ea   : > { %1713 = vset.pattern.permute.xlu0 %v1745_v8  ;;  %v1321_v31 = vrot.slane %v1267_v57, %v1068_v35  ;;  %vm1394_vm9 = vcmask 254976  }
 0x9ed   : > { %1272 = vadd.xlane.f32.xlu0 %v1271_v41 }
 0xa72   : > { %v1270_v11 = vpop.xlane.xlu0 %1269 }
 0xa73   : > { %v1274_v42 = vmul.f32 0.03125, %v1270_v11 }
 0xa75   : > { %v1276_v43 = vsub.f32 %v1259_v36, %v1274_v42 }
 0xa76   : > { %v1273_v44 = vpop.xlane.xlu0 %1272 }
 0xa77   : > { %v1275_v45 = vmul.f32 0.03125, %v1273_v44  ;;  %v1278_v46 = vmul.f32 %v1276_v43, %v1276_v43 }
 0xa79   : > { %v1277_v47 = vsub.f32 %v1260_v39, %v1275_v45  ;;  %v1280_v48 = vsel %vm402_vm2, %v1278_v46, 0.0 }
 0xa7a   : > { %1281 = vadd.xlane.f32.xlu1 %v1280_v48 }
 0xa7b   : > { %v1279_v49 = vmul.f32 %v1277_v47, %v1277_v47 }
 0xa7d   : > { %v1283_v50 = vsel %vm402_vm2, %v1279_v49, 0.0 }
 0xa7e   : > { %1284 = vadd.xlane.f32.xlu1 %v1283_v50 }
 0xb03   : > { %v1282_v51 = vpop.xlane.xlu1 %1281 }
 0xb04   : > { %v1286_v52 = vmul.f32 0.03125, %v1282_v51 }
 0xb06   : > { %v1288_v53 = vadd.f32 1e-05, %v1286_v52 }
 0xb07   : > { %v1285_v54 = vpop.xlane.xlu1 %1284 }
 0xb08   : > { %1715 = vrsqrt.f32 %v1288_v53  ;;  %v1287_v55 = vmul.f32 0.03125, %v1285_v54 }
 0xb0a   : > { %v1289_v56 = vadd.f32 1e-05, %v1287_v55 }
 0xb0c   : > { %1717 = vrsqrt.f32 %v1289_v56 }
 0xb15   : > { %v1716_v3 = vpop.eup %1715 }
 0xb16   : > { %v1292_v23 = vmul.f32 %v1716_v3, %v1276_v43 }
 0xb18   : > { %v1298_v60 = vmul.f32 %v1297_v58, %v1292_v23 }
 0xb19   : > { %v1718_v62 = vpop.eup %1717 }
 0xb1a   : > { %v2009_v63 = vadd.f32 %v1303_v20, %v1298_v60  ;;  %v1293_v0 = vmul.f32 %v1718_v62, %v1277_v47 }
 0xb1c   : > { %v1310_v1 = vmul.f32 %v1309_v61, %v2009_v63  ;;  %v1299_v2 = vmul.f32 %v1297_v58, %v1293_v0 }
 0xb1e   : > { %v1312_v4 = vsel %vm402_vm2, %v1310_v1, 0.0  ;;  %v2013_v7 = vadd.f32 %v1303_v20, %v1299_v2 }
 0xb1f   : > { %1313 = vadd.xlane.f32.xlu0 %v1312_v4 }
 0xb20   : > { %v1311_v10 = vmul.f32 %v1309_v61, %v2013_v7 }
 0xb22   : > { %v1315_v59 = vsel %vm402_vm2, %v1311_v10, 0.0 }
 0xb23   : > { %1316 = vadd.xlane.f32.xlu1 %v1315_v59 }
 0xba8   : > { %v1314_v12 = vpop.xlane.xlu0 %1313 }
 0xba9   : > { %v1322_v13 = vadd.f32 %v1321_v31, %v1314_v12 }
 0xbab   : > { %v1325_v14 = vsel %vm1324_vm7, %v1322_v13, -inf }
 0xbac   : > { %v1326_v15 = vrot.slane %v1325_v14, 4  ;;  %v1317_v16 = vpop.xlane.xlu1 %1316 }
 0xbad   : > { %v1323_v5 = vadd.f32 %v1321_v31, %v1317_v16 }
 0xbae   : > { %v1327_v17 = vmax.f32 %v1325_v14, %v1326_v15 }
 0xbaf   : > { %v1332_v18 = vsel %vm1324_vm7, %v1323_v5, -inf }
 0xbb0   : > { %v1328_v21 = vrot.slane %v1327_v17, 2  ;;  %v1333_v19 = vrot.slane %v1332_v18, 4 }
 0xbb2   : > { %v1329_v6 = vmax.f32 %v1327_v17, %v1328_v21  ;;  %v1334_v22 = vmax.f32 %v1332_v18, %v1333_v19 }
 0xbb4   : > { %v1330_v24 = vrot.slane %v1329_v6, 1  ;;  %v1335_v25 = vrot.slane %v1334_v22, 2 }
 0xbb6   : > { %v1331_v26 = vmax.f32 %v1329_v6, %v1330_v24  ;;  %v1336_v9 = vmax.f32 %v1334_v22, %v1335_v25 }
 0xbb8   : > { %v1339_v35 = vsub.f32 %v1322_v13, %v1331_v26  ;;  %v1337_v27 = vrot.slane %v1336_v9, 1 }
 0xbba   : > { %v1341_v28 = vmul.f32 1.442695, %v1339_v35  ;;  %v1338_v29 = vmax.f32 %v1336_v9, %v1337_v27 }
 0xbbc   : > { %1719 = vpow2.f32 %v1341_v28  ;;  %v1340_v30 = vsub.f32 %v1323_v5, %v1338_v29 }
 0xbbe   : > { %v1343_v32 = vmul.f32 1.442695, %v1340_v30 }
 0xbc0   : > { %1721 = vpow2.f32 %v1343_v32 }
 0xbc9   : > { %v1720_v33 = vpop.eup %1719 }
 0xbca   : > { %v1345_v34 = vsel %vm1324_vm7, %v1720_v33, 0.0 }
 0xbcb   : > { %v1346_v36 = vrot.slane %v1345_v34, 4 }
 0xbcd   : > { %v1722_v37 = vpop.eup %1721  ;;  %v1347_v38 = vadd.f32 %v1346_v36, %v1345_v34 }
 0xbce   : > { %v1352_v39 = vsel %vm1324_vm7, %v1722_v37, 0.0 }
 0xbcf   : > { %v1348_v40 = vrot.slane %v1347_v38, 2  ;;  %v1353_v41 = vrot.slane %v1352_v39, 4 }
 0xbd1   : > { %v1349_v11 = vadd.f32 %v1348_v40, %v1347_v38  ;;  %v1354_v42 = vadd.f32 %v1353_v41, %v1352_v39 }
 0xbd3   : > { %v1350_v43 = vrot.slane %v1349_v11, 1  ;;  %v1355_v44 = vrot.slane %v1354_v42, 2 }
 0xbd5   : > { %v1351_v45 = vadd.f32 %v1350_v43, %v1349_v11  ;;  %v1356_v46 = vadd.f32 %v1355_v44, %v1354_v42 }
 0xbd7   : > { %1723 = vrcp.f32 %v1351_v45  ;;  %v1357_v47 = vrot.slane %v1356_v46, 1 }
 0xbd9   : > { %v1358_v48 = vadd.f32 %v1357_v47, %v1356_v46 }
 0xbdb   : > { %1725 = vrcp.f32 %v1358_v48 }
 0xbe4   : > { %v1724_v49 = vpop.eup %1723 }
 0xbe5   : > { %v1361_v50 = vmul.f32 %v1724_v49, %v1720_v33 }
 0xbe7   : > { %1365 = vperm.xlu0 %1713, %v1361_v50  }
 0xbe8   : > { %v1726_v51 = vpop.eup %1725 }
 0xbe9   : > { %v1362_v52 = vmul.f32 %v1726_v51, %v1722_v37 }
 0xbeb   : > { %1370 = vperm.xlu1 %1714, %v1362_v52  }
 0xc62   : > { %v1366_v53 = vpop.permute.xlu0 %1365 }
 0xc63   : > { %v1373_v54 = vmul.f32 %v1366_v53, %v2009_v63 }
 0xc65   : > { %v1375_v55 = vsel %vm402_vm2, %v1373_v54, 0.0 }
 0xc66   : > { %v1376_v56 = vrot.slane %v1375_v55, 4  ;;  %v1371_v57 = vpop.permute.xlu1 %1370 }
 0xc67   : > { %v1374_v58 = vmul.f32 %v1371_v57, %v2013_v7 }
 0xc68   : > { %v1377_v3 = vadd.f32 %v1376_v56, %v1375_v55 }
 0xc69   : > { %v1382_v23 = vsel %vm402_vm2, %v1374_v58, 0.0 }
 0xc6a   : > { %v1378_v20 = vrot.slane %v1377_v3, 2  ;;  %v1383_v60 = vrot.slane %v1382_v23, 4 }
 0xc6c   : > { %v1379_v61 = vadd.f32 %v1378_v20, %v1377_v3  ;;  %v1384_v62 = vadd.f32 %v1383_v60, %v1382_v23 }
 0xc6e   : > { %v1385_v0 = vrot.slane %v1384_v62, 2  ;;  %v1380_v1 = vrot.slane %v1379_v61, 1 }
 0xc70   : > { %v1386_v2 = vadd.f32 %v1385_v0, %v1384_v62  ;;  %v1381_v10 = vadd.f32 %v1380_v1, %v1379_v61 }
 0xc72   : > { %v1387_v4 = vrot.slane %v1386_v2, 1 }
 0xc74   : > { %v1388_v63 = vadd.f32 %v1387_v4, %v1386_v2 }
 0xc76   : > { %v1392_v59 = vsel %vm1391_vm8, %v1388_v63, %v1381_v10 }
 0xc77   : > { %1395 = vst.msk [vmem:[%s2041_s8] sm:$0x3] %vm1394_vm9, %v1392_v59 }
 0xc78 PF: > { %s18_s27 = sadd.s32 1, %s1733_s27  }
 0xc79   : > { %p15_p6 = scmp.ge.s32.totalorder %s18_s27, 4  }
 0xc7b   :  { %17 = sbr.rel (!%p15_p6) target bundleno = 1 (0x1), region = 98 }

</bundles_post_ra>
